<compile_context>
chip_gen: v7x
topology: tpu7x:2x2x1
jax: 0.10.0
libtpu: 0.0.40
codegen_flags: <defaults>
</compile_context>

<pallas_src>
import math

import jax
import jax.numpy as jnp
from jax.experimental import pallas as pl
from jax.experimental.pallas import tpu as pltpu


LANE = 128            # lane-dense width for hidden / padded feature dims
MAX_BATCH_TILE = 512  # rows per grid step (sweepable; 512 ~ 85% of HBM roofline)


def _round_up(n: int, m: int) -> int:
    return ((n + m - 1) // m) * m


# --------------------------------------------------------------------------
# Pallas kernels
# --------------------------------------------------------------------------
def _mlp_body(h, w1_ref, b1_ref, wh_ref, bh_ref, w3_ref, b3_ref):
    """relu(h@W1+b1) -> relu(.@Wh+bh) -> .@W3+b3  (bf16 MXU, f32 accumulate)."""
    z = jnp.dot(h.astype(jnp.bfloat16), w1_ref[...],
                preferred_element_type=jnp.float32) + b1_ref[...]
    h = jnp.maximum(z, 0.0)
    z = jnp.dot(h.astype(jnp.bfloat16), wh_ref[...],
                preferred_element_type=jnp.float32) + bh_ref[...]
    h = jnp.maximum(z, 0.0)
    return jnp.dot(h.astype(jnp.bfloat16), w3_ref[...],
                   preferred_element_type=jnp.float32) + b3_ref[...]


def _accumulate_time_embedding(xpad_ref, emb_ref, t_col, unroll_threshold=64):
    """xpad_ref[...] += embeddings[t]  (exact f32 one-hot select over rows)."""
    T = emb_ref.shape[0]

    def step(i):
        sel = (t_col == i).astype(jnp.float32)             # (BT, 1)
        xpad_ref[...] += sel * emb_ref[pl.ds(i, 1), :]     # (1, Dp) broadcast

    if T <= unroll_threshold:
        for i in range(T):                                  # static unroll (tiny T)
            step(i)
    else:
        pl.loop(0, T)(step)                                 # scf.for for large T


def _mlp_kernel_temb(x_ref, t_ref, emb_ref, w1_ref, b1_ref, wh_ref, bh_ref,
                     w3_ref, b3_ref, out_ref, xpad_ref):
    D = x_ref.shape[1]          # true (unpadded) feature width
    Dout = out_ref.shape[1]

    # Fused time-embedding gather; doubles as the zero-extension of the
    # activations to the lane-dense width Dp (padded lanes stay exactly 0).
    t_col = t_ref[...]                                      # (BT, 1) int32
    xpad_ref[...] = jnp.zeros_like(xpad_ref)
    _accumulate_time_embedding(xpad_ref, emb_ref, t_col)

    # residual add of x into the real feature lanes (f32, VPU)
    xpad_ref[:, :D] = xpad_ref[:, :D] + x_ref[...]

    z = _mlp_body(xpad_ref[...], w1_ref, b1_ref, wh_ref, bh_ref, w3_ref, b3_ref)
    out_ref[...] = z[:, :Dout].astype(out_ref.dtype)


def _mlp_kernel_no_temb(x_ref, w1_ref, b1_ref, wh_ref, bh_ref,
                        w3_ref, b3_ref, out_ref, xpad_ref):
    D = x_ref.shape[1]
    Dout = out_ref.shape[1]
    # zero-extend x to the lane-dense width Dp entirely in VMEM
    xpad_ref[...] = jnp.zeros_like(xpad_ref)
    xpad_ref[:, :D] = x_ref[...]
    z = _mlp_body(xpad_ref[...], w1_ref, b1_ref, wh_ref, bh_ref, w3_ref, b3_ref)
    out_ref[...] = z[:, :Dout].astype(out_ref.dtype)


# --------------------------------------------------------------------------
# Wrapper
# --------------------------------------------------------------------------
def simple_diffusion_forward(x, t, params, emb_table,
                             require_time_embedding=True, out_dtype=None):
    """x: [B, D] float32, t: [B] int32 timestep indices. Returns [B, D]."""
    B, D = x.shape
    Dp, Hp = params["w1"].shape             # lane-dense weight dims
    out_dtype = x.dtype if out_dtype is None else out_dtype

    # Adaptive batch tile: big tiles for real batches (amortize per-step
    # overhead, fill the 256-wide MXU from M), small tile for tiny batches.
    # B > MAX_BATCH_TILE automatically yields >=2 tiles for the v7x megacore.
    BT = min(MAX_BATCH_TILE, _round_up(B, 8))
    Bp = _round_up(B, BT)
    num_tiles = Bp // BT

    # Batch-only padding; the feature dim keeps its true width D, so no
    # [Bp, 128] padded activation copies ever hit HBM.
    if Bp != B:
        x_in = jnp.zeros((Bp, D), x.dtype).at[:B].set(x)
    else:
        x_in = x

    tile_map = lambda i: (i, 0)             # batch-tiled activations / output
    const_map = lambda i: (0, 0)            # weights / table: DMA'd once, resident

    x_spec = pl.BlockSpec((BT, D), tile_map)
    weight_specs = [
        pl.BlockSpec(params["w1"].shape, const_map),
        pl.BlockSpec(params["b1"].shape, const_map),
        pl.BlockSpec(params["wh"].shape, const_map),
        pl.BlockSpec(params["bh"].shape, const_map),
        pl.BlockSpec(params["w3"].shape, const_map),
        pl.BlockSpec(params["b3"].shape, const_map),
    ]
    weights = (params["w1"], params["b1"], params["wh"], params["bh"],
               params["w3"], params["b3"])

    if require_time_embedding:
        if Bp != B:
            t_in = jnp.zeros((Bp,), jnp.int32).at[:B].set(t.astype(jnp.int32))
        else:
            t_in = t.astype(jnp.int32)
        t_in = t_in.reshape(Bp, 1)
        kernel = _mlp_kernel_temb
        in_specs = [x_spec,
                    pl.BlockSpec((BT, 1), tile_map),
                    pl.BlockSpec(emb_table.shape, const_map)] + weight_specs
        args = (x_in, t_in, emb_table) + weights
    else:
        kernel = _mlp_kernel_no_temb
        in_specs = [x_spec] + weight_specs
        args = (x_in,) + weights

    out = pl.pallas_call(
        kernel,
        out_shape=jax.ShapeDtypeStruct((Bp, D), out_dtype),
        grid=(num_tiles,),
        in_specs=in_specs,
        out_specs=pl.BlockSpec((BT, D), tile_map),
        scratch_shapes=[pltpu.VMEM((BT, Dp), jnp.float32)],
        compiler_params=pltpu.CompilerParams(
            dimension_semantics=("parallel",)),
    )(*args)

    # Row slice only — the output already has its true feature width D.
    return out[:B] if Bp != B else out


# --------------------------------------------------------------------------
# Parameter / embedding-table construction (deterministic, in-script)
# --------------------------------------------------------------------------
def make_sinusoidal_embeddings(time_steps: int, embed_dim: int) -> jnp.ndarray:
    assert embed_dim % 2 == 0, "sinusoidal embedding assumes even embed_dim"
    position = jnp.arange(time_steps, dtype=jnp.float32)[:, None]        # [T, 1]
    div = jnp.exp(
        jnp.arange(0, embed_dim, 2, dtype=jnp.float32)
        * -(math.log(10000.0) / embed_dim)
    )                                                                    # [E/2]
    emb = jnp.zeros((time_steps, embed_dim), dtype=jnp.float32)
    emb = emb.at[:, 0::2].set(jnp.sin(position * div))
    emb = emb.at[:, 1::2].set(jnp.cos(position * div))
    return emb


def pad_embedding_table(emb: jnp.ndarray, d_padded: int) -> jnp.ndarray:
    """One-time zero-pad of the [T, D] table to the kernel's [T, Dp] layout."""
    T, D = emb.shape
    return jnp.zeros((T, d_padded), emb.dtype).at[:, :D].set(emb)


def init_params(key, N: int, hidden_dim: int):
    """nn.Linear-style init (uniform +/- 1/sqrt(fan_in)).

    Weights are stored [in, out] (transposed vs. PyTorch), zero-padded to
    lane-dense (multiples of 128) shapes, and cast to bf16 for the MXU.
    Biases stay f32 (elementwise path). Zero padding is mathematically exact
    (relu(0)=0; zero rows/cols contribute nothing)."""
    D = N * 3
    Dp = _round_up(D, LANE)
    Hp = _round_up(hidden_dim, LANE)
    k = jax.random.split(key, 6)

    def lin(kw, kb, fan_in, fan_out, pin, pout):
        bound = 1.0 / math.sqrt(fan_in)
        w = jax.random.uniform(kw, (fan_in, fan_out), jnp.float32, -bound, bound)
        b = jax.random.uniform(kb, (fan_out,), jnp.float32, -bound, bound)
        wp = jnp.zeros((pin, pout), jnp.float32).at[:fan_in, :fan_out].set(w)
        bp = jnp.zeros((1, pout), jnp.float32).at[0, :fan_out].set(b)
        return wp.astype(jnp.bfloat16), bp

    w1, b1 = lin(k[0], k[1], D, hidden_dim, Dp, Hp)
    wh, bh = lin(k[2], k[3], hidden_dim, hidden_dim, Hp, Hp)
    w3, b3 = lin(k[4], k[5], hidden_dim, D, Hp, Dp)
    return {"w1": w1, "b1": b1, "wh": wh, "bh": bh, "w3": w3, "b3": b3,
            "D": D, "H": hidden_dim}


# Pure-JAX reference with identical numerics (bf16 matmul operands, f32 acc,
# exact f32 time-embedding add) so the kernel itself can be tightly checked.
def reference_forward(x, t, params, embeddings, require_time_embedding=True):
    D, H = params["D"], params["H"]
    w1 = params["w1"][:D, :H]; b1 = params["b1"][0, :H]
    wh = params["wh"][:H, :H]; bh = params["bh"][0, :H]
    w3 = params["w3"][:H, :D]; b3 = params["b3"][0, :D]
    h = x + embeddings[t] if require_time_embedding else x
    h = jnp.maximum(jnp.dot(h.astype(jnp.bfloat16), w1,
                            preferred_element_type=jnp.float32) + b1, 0.0)
    h = jnp.maximum(jnp.dot(h.astype(jnp.bfloat16), wh,
                            preferred_element_type=jnp.float32) + bh, 0.0)
    return jnp.dot(h.astype(jnp.bfloat16), w3,
                   preferred_element_type=jnp.float32) + b3


if __name__ == "__main__":
    # Module-consistent shapes: N=8 -> D=24, hidden_dim=32, T=10.
    N = 8
    hidden_dim = 32
    num_time_steps = 10
    D = N * 3

    key = jax.random.PRNGKey(0)
    kx, kt, kp, kx2, kt2 = jax.random.split(key, 5)

    params = init_params(kp, N, hidden_dim)
    emb = make_sinusoidal_embeddings(num_time_steps, D)              # [T, D] (ref)
    emb_table = pad_embedding_table(emb, params["w1"].shape[0])      # [T, Dp] (kernel)

    # Small batch (B=4): single tile, with time embedding (default config).
    B = 4
    x = jax.random.normal(kx, (B, D), dtype=jnp.float32)
    t = jax.random.randint(kt, (B,), 0, num_time_steps, dtype=jnp.int32)

    out = jax.block_until_ready(
        simple_diffusion_forward(x, t, params, emb_table, True))
    ref = reference_forward(x, t, params, emb, True)
    assert out.shape == (B, D)
    assert jnp.allclose(out, ref, atol=1e-3, rtol=1e-3), "mismatch (temb path)"

    # Without time embedding (separate, temb-free kernel variant).
    out2 = jax.block_until_ready(
        simple_diffusion_forward(x, t, params, emb_table, False))
    ref2 = reference_forward(x, t, params, emb, False)
    assert jnp.allclose(out2, ref2, atol=1e-3, rtol=1e-3), "mismatch (no-temb path)"

    # Larger batch: exercises batch padding + the multi-tile "parallel" grid.
    B2 = 600
    x2 = jax.random.normal(kx2, (B2, D), dtype=jnp.float32)
    t2 = jax.random.randint(kt2, (B2,), 0, num_time_steps, dtype=jnp.int32)
    out3 = jax.block_until_ready(
        simple_diffusion_forward(x2, t2, params, emb_table, True))
    ref3 = reference_forward(x2, t2, params, emb, True)
    assert out3.shape == (B2, D)
    assert jnp.allclose(out3, ref3, atol=1e-3, rtol=1e-3), "mismatch (batched path)"

    print("KERNEL_OK")
</pallas_src>

<mosaic_0001>
module attributes {stable_mosaic.version = 11 : i64} {
  func.func @_mlp_kernel_temb(%arg0: i32, %arg1: memref<8x24xf32, #tpu.memory_space<vmem>>, %arg2: memref<8x1xi32, #tpu.memory_space<vmem>>, %arg3: memref<10x128xf32, #tpu.memory_space<vmem>>, %arg4: memref<128x128xbf16, #tpu.memory_space<vmem>>, %arg5: memref<1x128xf32, #tpu.memory_space<vmem>>, %arg6: memref<128x128xbf16, #tpu.memory_space<vmem>>, %arg7: memref<1x128xf32, #tpu.memory_space<vmem>>, %arg8: memref<128x128xbf16, #tpu.memory_space<vmem>>, %arg9: memref<1x128xf32, #tpu.memory_space<vmem>>, %arg10: memref<8x24xf32, #tpu.memory_space<vmem>>, %arg11: memref<8x128xf32, #tpu.memory_space<vmem>>) attributes {dimension_semantics = [#tpu.dimension_semantics<parallel>], iteration_bounds = array<i64: 1>, scalar_prefetch = 0 : i64, scratch_operands = 1 : i64, tpu.core_type = #tpu.core_type<tc>, window_params = [{transform_indices = @transform_0, window_bounds = array<i64: 8, 24>}, {transform_indices = @transform_1, window_bounds = array<i64: 8, 1>}, {pipeline_mode = #tpu.pipeline_mode<synchronous>, transform_indices = @transform_2, window_bounds = array<i64: 10, 128>}, {pipeline_mode = #tpu.pipeline_mode<synchronous>, transform_indices = @transform_3, window_bounds = array<i64: 128, 128>}, {pipeline_mode = #tpu.pipeline_mode<synchronous>, transform_indices = @transform_4, window_bounds = array<i64: 1, 128>}, {pipeline_mode = #tpu.pipeline_mode<synchronous>, transform_indices = @transform_5, window_bounds = array<i64: 128, 128>}, {pipeline_mode = #tpu.pipeline_mode<synchronous>, transform_indices = @transform_6, window_bounds = array<i64: 1, 128>}, {pipeline_mode = #tpu.pipeline_mode<synchronous>, transform_indices = @transform_7, window_bounds = array<i64: 128, 128>}, {pipeline_mode = #tpu.pipeline_mode<synchronous>, transform_indices = @transform_8, window_bounds = array<i64: 1, 128>}, {transform_indices = @transform_9, window_bounds = array<i64: 8, 24>}]} {
    %c0 = arith.constant 0 : index
    %c0_0 = arith.constant 0 : index
    %0 = vector.load %arg2[%c0, %c0_0] : memref<8x1xi32, #tpu.memory_space<vmem>>, vector<8x1xi32>
    %cst = arith.constant 0.000000e+00 : f32
    %1 = vector.broadcast %cst : f32 to vector<8x128xf32>
    %c0_1 = arith.constant 0 : index
    %c0_2 = arith.constant 0 : index
    %2 = vector.load %arg11[%c0_1, %c0_2] : memref<8x128xf32, #tpu.memory_space<vmem>>, vector<8x128xf32>
    tpu.vector_store %arg11[%c0_1, %c0_2], %1 {strides = array<i32>} : memref<8x128xf32, #tpu.memory_space<vmem>>, vector<8x128xf32>,
    %c0_i32 = arith.constant 0 : i32
    %3 = vector.broadcast %c0_i32 : i32 to vector<8x1xi32>
    %4 = arith.cmpi eq, %0, %3 : vector<8x1xi32>
    %5 = arith.extui %4 : vector<8x1xi1> to vector<8x1xi32>
    %6 = arith.sitofp %5 : vector<8x1xi32> to vector<8x1xf32>
    %c0_3 = arith.constant 0 : index
    %c0_4 = arith.constant 0 : index
    %7 = vector.load %arg11[%c0_3, %c0_4] : memref<8x128xf32, #tpu.memory_space<vmem>>, vector<8x128xf32>
    %c0_5 = arith.constant 0 : index
    %c0_6 = arith.constant 0 : index
    %8 = vector.load %arg3[%c0_5, %c0_6] : memref<10x128xf32, #tpu.memory_space<vmem>>, vector<1x128xf32>
    %9 = vector.broadcast %6 : vector<8x1xf32> to vector<8x128xf32>
    %10 = vector.broadcast %8 : vector<1x128xf32> to vector<8x128xf32>
    %11 = arith.mulf %9, %10 : vector<8x128xf32>
    %12 = arith.addf %7, %11 : vector<8x128xf32>
    %c0_7 = arith.constant 0 : index
    %c0_8 = arith.constant 0 : index
    %13 = vector.load %arg11[%c0_7, %c0_8] : memref<8x128xf32, #tpu.memory_space<vmem>>, vector<8x128xf32>
    tpu.vector_store %arg11[%c0_7, %c0_8], %12 {strides = array<i32>} : memref<8x128xf32, #tpu.memory_space<vmem>>, vector<8x128xf32>,
    %c1_i32 = arith.constant 1 : i32
    %14 = vector.broadcast %c1_i32 : i32 to vector<8x1xi32>
    %15 = arith.cmpi eq, %0, %14 : vector<8x1xi32>
    %16 = arith.extui %15 : vector<8x1xi1> to vector<8x1xi32>
    %17 = arith.sitofp %16 : vector<8x1xi32> to vector<8x1xf32>
    %c0_9 = arith.constant 0 : index
    %c0_10 = arith.constant 0 : index
    %18 = vector.load %arg11[%c0_9, %c0_10] : memref<8x128xf32, #tpu.memory_space<vmem>>, vector<8x128xf32>
    %c1 = arith.constant 1 : index
    %c0_11 = arith.constant 0 : index
    %19 = vector.load %arg3[%c1, %c0_11] : memref<10x128xf32, #tpu.memory_space<vmem>>, vector<1x128xf32>
    %20 = vector.broadcast %17 : vector<8x1xf32> to vector<8x128xf32>
    %21 = vector.broadcast %19 : vector<1x128xf32> to vector<8x128xf32>
    %22 = arith.mulf %20, %21 : vector<8x128xf32>
    %23 = arith.addf %18, %22 : vector<8x128xf32>
    %c0_12 = arith.constant 0 : index
    %c0_13 = arith.constant 0 : index
    %24 = vector.load %arg11[%c0_12, %c0_13] : memref<8x128xf32, #tpu.memory_space<vmem>>, vector<8x128xf32>
    tpu.vector_store %arg11[%c0_12, %c0_13], %23 {strides = array<i32>} : memref<8x128xf32, #tpu.memory_space<vmem>>, vector<8x128xf32>,
    %c2_i32 = arith.constant 2 : i32
    %25 = vector.broadcast %c2_i32 : i32 to vector<8x1xi32>
    %26 = arith.cmpi eq, %0, %25 : vector<8x1xi32>
    %27 = arith.extui %26 : vector<8x1xi1> to vector<8x1xi32>
    %28 = arith.sitofp %27 : vector<8x1xi32> to vector<8x1xf32>
    %c0_14 = arith.constant 0 : index
    %c0_15 = arith.constant 0 : index
    %29 = vector.load %arg11[%c0_14, %c0_15] : memref<8x128xf32, #tpu.memory_space<vmem>>, vector<8x128xf32>
    %c2 = arith.constant 2 : index
    %c0_16 = arith.constant 0 : index
    %30 = vector.load %arg3[%c2, %c0_16] : memref<10x128xf32, #tpu.memory_space<vmem>>, vector<1x128xf32>
    %31 = vector.broadcast %28 : vector<8x1xf32> to vector<8x128xf32>
    %32 = vector.broadcast %30 : vector<1x128xf32> to vector<8x128xf32>
    %33 = arith.mulf %31, %32 : vector<8x128xf32>
    %34 = arith.addf %29, %33 : vector<8x128xf32>
    %c0_17 = arith.constant 0 : index
    %c0_18 = arith.constant 0 : index
    %35 = vector.load %arg11[%c0_17, %c0_18] : memref<8x128xf32, #tpu.memory_space<vmem>>, vector<8x128xf32>
    tpu.vector_store %arg11[%c0_17, %c0_18], %34 {strides = array<i32>} : memref<8x128xf32, #tpu.memory_space<vmem>>, vector<8x128xf32>,
    %c3_i32 = arith.constant 3 : i32
    %36 = vector.broadcast %c3_i32 : i32 to vector<8x1xi32>
    %37 = arith.cmpi eq, %0, %36 : vector<8x1xi32>
    %38 = arith.extui %37 : vector<8x1xi1> to vector<8x1xi32>
    %39 = arith.sitofp %38 : vector<8x1xi32> to vector<8x1xf32>
    %c0_19 = arith.constant 0 : index
    %c0_20 = arith.constant 0 : index
    %40 = vector.load %arg11[%c0_19, %c0_20] : memref<8x128xf32, #tpu.memory_space<vmem>>, vector<8x128xf32>
    %c3 = arith.constant 3 : index
    %c0_21 = arith.constant 0 : index
    %41 = vector.load %arg3[%c3, %c0_21] : memref<10x128xf32, #tpu.memory_space<vmem>>, vector<1x128xf32>
    %42 = vector.broadcast %39 : vector<8x1xf32> to vector<8x128xf32>
    %43 = vector.broadcast %41 : vector<1x128xf32> to vector<8x128xf32>
    %44 = arith.mulf %42, %43 : vector<8x128xf32>
    %45 = arith.addf %40, %44 : vector<8x128xf32>
    %c0_22 = arith.constant 0 : index
    %c0_23 = arith.constant 0 : index
    %46 = vector.load %arg11[%c0_22, %c0_23] : memref<8x128xf32, #tpu.memory_space<vmem>>, vector<8x128xf32>
    tpu.vector_store %arg11[%c0_22, %c0_23], %45 {strides = array<i32>} : memref<8x128xf32, #tpu.memory_space<vmem>>, vector<8x128xf32>,
    %c4_i32 = arith.constant 4 : i32
    %47 = vector.broadcast %c4_i32 : i32 to vector<8x1xi32>
    %48 = arith.cmpi eq, %0, %47 : vector<8x1xi32>
    %49 = arith.extui %48 : vector<8x1xi1> to vector<8x1xi32>
    %50 = arith.sitofp %49 : vector<8x1xi32> to vector<8x1xf32>
    %c0_24 = arith.constant 0 : index
    %c0_25 = arith.constant 0 : index
    %51 = vector.load %arg11[%c0_24, %c0_25] : memref<8x128xf32, #tpu.memory_space<vmem>>, vector<8x128xf32>
    %c4 = arith.constant 4 : index
    %c0_26 = arith.constant 0 : index
    %52 = vector.load %arg3[%c4, %c0_26] : memref<10x128xf32, #tpu.memory_space<vmem>>, vector<1x128xf32>
    %53 = vector.broadcast %50 : vector<8x1xf32> to vector<8x128xf32>
    %54 = vector.broadcast %52 : vector<1x128xf32> to vector<8x128xf32>
    %55 = arith.mulf %53, %54 : vector<8x128xf32>
    %56 = arith.addf %51, %55 : vector<8x128xf32>
    %c0_27 = arith.constant 0 : index
    %c0_28 = arith.constant 0 : index
    %57 = vector.load %arg11[%c0_27, %c0_28] : memref<8x128xf32, #tpu.memory_space<vmem>>, vector<8x128xf32>
    tpu.vector_store %arg11[%c0_27, %c0_28], %56 {strides = array<i32>} : memref<8x128xf32, #tpu.memory_space<vmem>>, vector<8x128xf32>,
    %c5_i32 = arith.constant 5 : i32
    %58 = vector.broadcast %c5_i32 : i32 to vector<8x1xi32>
    %59 = arith.cmpi eq, %0, %58 : vector<8x1xi32>
    %60 = arith.extui %59 : vector<8x1xi1> to vector<8x1xi32>
    %61 = arith.sitofp %60 : vector<8x1xi32> to vector<8x1xf32>
    %c0_29 = arith.constant 0 : index
    %c0_30 = arith.constant 0 : index
    %62 = vector.load %arg11[%c0_29, %c0_30] : memref<8x128xf32, #tpu.memory_space<vmem>>, vector<8x128xf32>
    %c5 = arith.constant 5 : index
    %c0_31 = arith.constant 0 : index
    %63 = vector.load %arg3[%c5, %c0_31] : memref<10x128xf32, #tpu.memory_space<vmem>>, vector<1x128xf32>
    %64 = vector.broadcast %61 : vector<8x1xf32> to vector<8x128xf32>
    %65 = vector.broadcast %63 : vector<1x128xf32> to vector<8x128xf32>
    %66 = arith.mulf %64, %65 : vector<8x128xf32>
    %67 = arith.addf %62, %66 : vector<8x128xf32>
    %c0_32 = arith.constant 0 : index
    %c0_33 = arith.constant 0 : index
    %68 = vector.load %arg11[%c0_32, %c0_33] : memref<8x128xf32, #tpu.memory_space<vmem>>, vector<8x128xf32>
    tpu.vector_store %arg11[%c0_32, %c0_33], %67 {strides = array<i32>} : memref<8x128xf32, #tpu.memory_space<vmem>>, vector<8x128xf32>,
    %c6_i32 = arith.constant 6 : i32
    %69 = vector.broadcast %c6_i32 : i32 to vector<8x1xi32>
    %70 = arith.cmpi eq, %0, %69 : vector<8x1xi32>
    %71 = arith.extui %70 : vector<8x1xi1> to vector<8x1xi32>
    %72 = arith.sitofp %71 : vector<8x1xi32> to vector<8x1xf32>
    %c0_34 = arith.constant 0 : index
    %c0_35 = arith.constant 0 : index
    %73 = vector.load %arg11[%c0_34, %c0_35] : memref<8x128xf32, #tpu.memory_space<vmem>>, vector<8x128xf32>
    %c6 = arith.constant 6 : index
    %c0_36 = arith.constant 0 : index
    %74 = vector.load %arg3[%c6, %c0_36] : memref<10x128xf32, #tpu.memory_space<vmem>>, vector<1x128xf32>
    %75 = vector.broadcast %72 : vector<8x1xf32> to vector<8x128xf32>
    %76 = vector.broadcast %74 : vector<1x128xf32> to vector<8x128xf32>
    %77 = arith.mulf %75, %76 : vector<8x128xf32>
    %78 = arith.addf %73, %77 : vector<8x128xf32>
    %c0_37 = arith.constant 0 : index
    %c0_38 = arith.constant 0 : index
    %79 = vector.load %arg11[%c0_37, %c0_38] : memref<8x128xf32, #tpu.memory_space<vmem>>, vector<8x128xf32>
    tpu.vector_store %arg11[%c0_37, %c0_38], %78 {strides = array<i32>} : memref<8x128xf32, #tpu.memory_space<vmem>>, vector<8x128xf32>,
    %c7_i32 = arith.constant 7 : i32
    %80 = vector.broadcast %c7_i32 : i32 to vector<8x1xi32>
    %81 = arith.cmpi eq, %0, %80 : vector<8x1xi32>
    %82 = arith.extui %81 : vector<8x1xi1> to vector<8x1xi32>
    %83 = arith.sitofp %82 : vector<8x1xi32> to vector<8x1xf32>
    %c0_39 = arith.constant 0 : index
    %c0_40 = arith.constant 0 : index
    %84 = vector.load %arg11[%c0_39, %c0_40] : memref<8x128xf32, #tpu.memory_space<vmem>>, vector<8x128xf32>
    %c7 = arith.constant 7 : index
    %c0_41 = arith.constant 0 : index
    %85 = vector.load %arg3[%c7, %c0_41] : memref<10x128xf32, #tpu.memory_space<vmem>>, vector<1x128xf32>
    %86 = vector.broadcast %83 : vector<8x1xf32> to vector<8x128xf32>
    %87 = vector.broadcast %85 : vector<1x128xf32> to vector<8x128xf32>
    %88 = arith.mulf %86, %87 : vector<8x128xf32>
    %89 = arith.addf %84, %88 : vector<8x128xf32>
    %c0_42 = arith.constant 0 : index
    %c0_43 = arith.constant 0 : index
    %90 = vector.load %arg11[%c0_42, %c0_43] : memref<8x128xf32, #tpu.memory_space<vmem>>, vector<8x128xf32>
    tpu.vector_store %arg11[%c0_42, %c0_43], %89 {strides = array<i32>} : memref<8x128xf32, #tpu.memory_space<vmem>>, vector<8x128xf32>,
    %c8_i32 = arith.constant 8 : i32
    %91 = vector.broadcast %c8_i32 : i32 to vector<8x1xi32>
    %92 = arith.cmpi eq, %0, %91 : vector<8x1xi32>
    %93 = arith.extui %92 : vector<8x1xi1> to vector<8x1xi32>
    %94 = arith.sitofp %93 : vector<8x1xi32> to vector<8x1xf32>
    %c0_44 = arith.constant 0 : index
    %c0_45 = arith.constant 0 : index
    %95 = vector.load %arg11[%c0_44, %c0_45] : memref<8x128xf32, #tpu.memory_space<vmem>>, vector<8x128xf32>
    %c8 = arith.constant 8 : index
    %c0_46 = arith.constant 0 : index
    %96 = vector.load %arg3[%c8, %c0_46] : memref<10x128xf32, #tpu.memory_space<vmem>>, vector<1x128xf32>
    %97 = vector.broadcast %94 : vector<8x1xf32> to vector<8x128xf32>
    %98 = vector.broadcast %96 : vector<1x128xf32> to vector<8x128xf32>
    %99 = arith.mulf %97, %98 : vector<8x128xf32>
    %100 = arith.addf %95, %99 : vector<8x128xf32>
    %c0_47 = arith.constant 0 : index
    %c0_48 = arith.constant 0 : index
    %101 = vector.load %arg11[%c0_47, %c0_48] : memref<8x128xf32, #tpu.memory_space<vmem>>, vector<8x128xf32>
    tpu.vector_store %arg11[%c0_47, %c0_48], %100 {strides = array<i32>} : memref<8x128xf32, #tpu.memory_space<vmem>>, vector<8x128xf32>,
    %c9_i32 = arith.constant 9 : i32
    %102 = vector.broadcast %c9_i32 : i32 to vector<8x1xi32>
    %103 = arith.cmpi eq, %0, %102 : vector<8x1xi32>
    %104 = arith.extui %103 : vector<8x1xi1> to vector<8x1xi32>
    %105 = arith.sitofp %104 : vector<8x1xi32> to vector<8x1xf32>
    %c0_49 = arith.constant 0 : index
    %c0_50 = arith.constant 0 : index
    %106 = vector.load %arg11[%c0_49, %c0_50] : memref<8x128xf32, #tpu.memory_space<vmem>>, vector<8x128xf32>
    %c9 = arith.constant 9 : index
    %c0_51 = arith.constant 0 : index
    %107 = vector.load %arg3[%c9, %c0_51] : memref<10x128xf32, #tpu.memory_space<vmem>>, vector<1x128xf32>
    %108 = vector.broadcast %105 : vector<8x1xf32> to vector<8x128xf32>
    %109 = vector.broadcast %107 : vector<1x128xf32> to vector<8x128xf32>
    %110 = arith.mulf %108, %109 : vector<8x128xf32>
    %111 = arith.addf %106, %110 : vector<8x128xf32>
    %c0_52 = arith.constant 0 : index
    %c0_53 = arith.constant 0 : index
    %112 = vector.load %arg11[%c0_52, %c0_53] : memref<8x128xf32, #tpu.memory_space<vmem>>, vector<8x128xf32>
    tpu.vector_store %arg11[%c0_52, %c0_53], %111 {strides = array<i32>} : memref<8x128xf32, #tpu.memory_space<vmem>>, vector<8x128xf32>,
    %c0_54 = arith.constant 0 : index
    %c0_55 = arith.constant 0 : index
    %113 = vector.load %arg11[%c0_54, %c0_55] : memref<8x128xf32, #tpu.memory_space<vmem>>, vector<8x24xf32>
    %c0_56 = arith.constant 0 : index
    %c0_57 = arith.constant 0 : index
    %114 = vector.load %arg1[%c0_56, %c0_57] : memref<8x24xf32, #tpu.memory_space<vmem>>, vector<8x24xf32>
    %115 = arith.addf %113, %114 : vector<8x24xf32>
    %c0_58 = arith.constant 0 : index
    %c0_59 = arith.constant 0 : index
    %116 = vector.load %arg11[%c0_58, %c0_59] : memref<8x128xf32, #tpu.memory_space<vmem>>, vector<8x24xf32>
    tpu.vector_store %arg11[%c0_58, %c0_59], %115 {strides = array<i32>} : memref<8x128xf32, #tpu.memory_space<vmem>>, vector<8x24xf32>,
    %c0_60 = arith.constant 0 : index
    %c0_61 = arith.constant 0 : index
    %117 = vector.load %arg11[%c0_60, %c0_61] : memref<8x128xf32, #tpu.memory_space<vmem>>, vector<8x128xf32>
    %118 = arith.truncf %117 : vector<8x128xf32> to vector<8x128xbf16>
    %c0_62 = arith.constant 0 : index
    %c0_63 = arith.constant 0 : index
    %119 = vector.load %arg4[%c0_62, %c0_63] : memref<128x128xbf16, #tpu.memory_space<vmem>>, vector<128x128xbf16>
    %cst_64 = arith.constant dense<0.000000e+00> : vector<8x128xf32>
    %120 = tpu.matmul %118, %119, %cst_64 {dimension_numbers = #tpu.dot_dimension_numbers<[1], [0], [0], [1], [0, 0, 1, 1], [], []>} : vector<8x128xbf16>, vector<128x128xbf16>, vector<8x128xf32> -> vector<8x128xf32>
    %c0_65 = arith.constant 0 : index
    %c0_66 = arith.constant 0 : index
    %121 = vector.load %arg5[%c0_65, %c0_66] : memref<1x128xf32, #tpu.memory_space<vmem>>, vector<1x128xf32>
    %122 = vector.broadcast %121 : vector<1x128xf32> to vector<8x128xf32>
    %123 = arith.addf %120, %122 : vector<8x128xf32>
    %cst_67 = arith.constant 0.000000e+00 : f32
    %124 = vector.broadcast %cst_67 : f32 to vector<8x128xf32>
    %125 = arith.maximumf %123, %124 : vector<8x128xf32>
    %126 = arith.truncf %125 : vector<8x128xf32> to vector<8x128xbf16>
    %c0_68 = arith.constant 0 : index
    %c0_69 = arith.constant 0 : index
    %127 = vector.load %arg6[%c0_68, %c0_69] : memref<128x128xbf16, #tpu.memory_space<vmem>>, vector<128x128xbf16>
    %cst_70 = arith.constant dense<0.000000e+00> : vector<8x128xf32>
    %128 = tpu.matmul %126, %127, %cst_70 {dimension_numbers = #tpu.dot_dimension_numbers<[1], [0], [0], [1], [0, 0, 1, 1], [], []>} : vector<8x128xbf16>, vector<128x128xbf16>, vector<8x128xf32> -> vector<8x128xf32>
    %c0_71 = arith.constant 0 : index
    %c0_72 = arith.constant 0 : index
    %129 = vector.load %arg7[%c0_71, %c0_72] : memref<1x128xf32, #tpu.memory_space<vmem>>, vector<1x128xf32>
    %130 = vector.broadcast %129 : vector<1x128xf32> to vector<8x128xf32>
    %131 = arith.addf %128, %130 : vector<8x128xf32>
    %cst_73 = arith.constant 0.000000e+00 : f32
    %132 = vector.broadcast %cst_73 : f32 to vector<8x128xf32>
    %133 = arith.maximumf %131, %132 : vector<8x128xf32>
    %134 = arith.truncf %133 : vector<8x128xf32> to vector<8x128xbf16>
    %c0_74 = arith.constant 0 : index
    %c0_75 = arith.constant 0 : index
    %135 = vector.load %arg8[%c0_74, %c0_75] : memref<128x128xbf16, #tpu.memory_space<vmem>>, vector<128x128xbf16>
    %cst_76 = arith.constant dense<0.000000e+00> : vector<8x128xf32>
    %136 = tpu.matmul %134, %135, %cst_76 {dimension_numbers = #tpu.dot_dimension_numbers<[1], [0], [0], [1], [0, 0, 1, 1], [], []>} : vector<8x128xbf16>, vector<128x128xbf16>, vector<8x128xf32> -> vector<8x128xf32>
    %c0_77 = arith.constant 0 : index
    %c0_78 = arith.constant 0 : index
    %137 = vector.load %arg9[%c0_77, %c0_78] : memref<1x128xf32, #tpu.memory_space<vmem>>, vector<1x128xf32>
    %138 = vector.broadcast %137 : vector<1x128xf32> to vector<8x128xf32>
    %139 = arith.addf %136, %138 : vector<8x128xf32>
    %140 = vector.extract_strided_slice %139 {offsets = [0, 0], sizes = [8, 24], strides = [1, 1]} : vector<8x128xf32> to vector<8x24xf32>
    %c0_79 = arith.constant 0 : index
    %c0_80 = arith.constant 0 : index
    %141 = vector.load %arg10[%c0_79, %c0_80] : memref<8x24xf32, #tpu.memory_space<vmem>>, vector<8x24xf32>
    tpu.vector_store %arg10[%c0_79, %c0_80], %140 {strides = array<i32>} : memref<8x24xf32, #tpu.memory_space<vmem>>, vector<8x24xf32>,
    return
  }
  func.func @transform_0(%arg0: i32) -> (i32, i32) {
    %c0_i32 = arith.constant 0 : i32
    %c0_i32_0 = arith.constant 0 : i32
    return %arg0, %c0_i32 : i32, i32
  }
  func.func @transform_1(%arg0: i32) -> (i32, i32) {
    %c0_i32 = arith.constant 0 : i32
    %c0_i32_0 = arith.constant 0 : i32
    return %arg0, %c0_i32 : i32, i32
  }
  func.func @transform_2(%arg0: i32) -> (i32, i32) {
    %c0_i32 = arith.constant 0 : i32
    %c0_i32_0 = arith.constant 0 : i32
    %c0_i32_1 = arith.constant 0 : i32
    return %c0_i32, %c0_i32_0 : i32, i32
  }
  func.func @transform_3(%arg0: i32) -> (i32, i32) {
    %c0_i32 = arith.constant 0 : i32
    %c0_i32_0 = arith.constant 0 : i32
    %c0_i32_1 = arith.constant 0 : i32
    return %c0_i32, %c0_i32_0 : i32, i32
  }
  func.func @transform_4(%arg0: i32) -> (i32, i32) {
    %c0_i32 = arith.constant 0 : i32
    %c0_i32_0 = arith.constant 0 : i32
    %c0_i32_1 = arith.constant 0 : i32
    return %c0_i32, %c0_i32_0 : i32, i32
  }
  func.func @transform_5(%arg0: i32) -> (i32, i32) {
    %c0_i32 = arith.constant 0 : i32
    %c0_i32_0 = arith.constant 0 : i32
    %c0_i32_1 = arith.constant 0 : i32
    return %c0_i32, %c0_i32_0 : i32, i32
  }
  func.func @transform_6(%arg0: i32) -> (i32, i32) {
    %c0_i32 = arith.constant 0 : i32
    %c0_i32_0 = arith.constant 0 : i32
    %c0_i32_1 = arith.constant 0 : i32
    return %c0_i32, %c0_i32_0 : i32, i32
  }
  func.func @transform_7(%arg0: i32) -> (i32, i32) {
    %c0_i32 = arith.constant 0 : i32
    %c0_i32_0 = arith.constant 0 : i32
    %c0_i32_1 = arith.constant 0 : i32
    return %c0_i32, %c0_i32_0 : i32, i32
  }
  func.func @transform_8(%arg0: i32) -> (i32, i32) {
    %c0_i32 = arith.constant 0 : i32
    %c0_i32_0 = arith.constant 0 : i32
    %c0_i32_1 = arith.constant 0 : i32
    return %c0_i32, %c0_i32_0 : i32, i32
  }
  func.func @transform_9(%arg0: i32) -> (i32, i32) {
    %c0_i32 = arith.constant 0 : i32
    %c0_i32_0 = arith.constant 0 : i32
    return %arg0, %c0_i32 : i32, i32
  }
}

</mosaic_0001>

<bundles_post_ra>
// kernel: tpu_custom_call.1
= control target key start
LH: loop header
LB: loop body
LE: loop exit
PB: predicated region body
PF: predicated region fallthrough
CT: control target
= control target key end

     0   :  { %14 = vsyncpa [#allocation4], 0  ;;  %s1122_s0 = inlined_call_operand.hbm [shape: f32[8,24], index: 0, kind: input, shape index: {}]   ;;  %s1123_s1 = inlined_call_operand.vmem [shape: s32[8,1], index: 1, kind: input, shape index: {}]   ;;  %s1124_s2 = inlined_call_operand.vmem [shape: f32[10,128], index: 2, kind: input, shape index: {}]   ;;  %s1125_s3 = inlined_call_operand.hbm [shape: bf16[128,128], index: 3, kind: input, shape index: {}]   ;;  %s1126_s4 = inlined_call_operand.vmem [shape: f32[1,128], index: 4, kind: input, shape index: {}]   ;;  %s1127_s5 = inlined_call_operand.hbm [shape: bf16[128,128], index: 5, kind: input, shape index: {}]   ;;  %s1128_s6 = inlined_call_operand.vmem [shape: f32[1,128], index: 6, kind: input, shape index: {}]   ;;  %s1129_s7 = inlined_call_operand.hbm [shape: bf16[128,128], index: 7, kind: input, shape index: {}]   ;;  %s1130_s8 = inlined_call_operand.vmem [shape: f32[1,128], index: 8, kind: input, shape index: {}]   ;;  %s1131_s9 = inlined_call_operand.hbm [shape: f32[8,24], index: 9, kind: output, shape index: {}]  }
   0x1   :  { %15 = vsyncpa [#allocation7], 0 }
   0x2   :  { %16 = vsyncpa [#allocation10], 0 }
   0x3   :  { %17 = vsyncpa [#allocation5], 0  ;;  %s909_s30 = smov [#allocation6]   ;;  %s791_s13 = scalar_lea.hbm %s1125_s3, 1024 }
   0x4   :  { %s37_s10 = sshll.u32 %s909_s30, 4  ;;  %p792_p0 = scmp.ne.s32.totalorder %s1125_s3, %s791_s13  ;;  %s38_s10 = int_to_ptr.vmem [resolvable:$true] %s37_s10 }
   0x5   :  { %p795_p1 = scmp.lt.u32.totalorder %s791_s13, %s1125_s3 }
   0x7   :  { %p797_p2 = pnand %p795_p1, %p792_p0 }
   0x9   :  { %800 = shalt.err (!%p797_p2)
}
   0xa   :  { %s801_s18 = scalar_lea.vmem %s38_s10, 1024  ;;  %p806_p4 = scmp.lt.s32.totalorder %s38_s10, %s38_s10 }
   0xb   :  { %p802_p3 = scmp.ne.s32.totalorder %s38_s10, %s801_s18  ;;  %p807_p5 = scmp.lt.s32.totalorder %s801_s18, %s801_s18 }
   0xd   :  { %p808_p6 = por %p807_p5, %p806_p4 }
   0xf   :  { %p809_p7 = pnand %p808_p6, %p802_p3 }
  0x11   :  { %812 = shalt.err (!%p809_p7)
}
  0x12   :  { %s910_s19 = smov 64   ;;  %s911_s20 = smov 4  }
  0x13   :  { %43 = dma.hbm_to_vmem [thread:$0]  %s1125_s3, 1024, %s38_s10, [#allocation7], %s910_s19, %s910_s19, %s911_s20  }
  0x14   :  { %s912_s23 = smov [#allocation3]   ;;  %s913_s25 = smov [#allocation8]  }
  0x15   :  { %s24_s24 = sshll.u32 %s912_s23, 4  ;;  %s51_s26 = sshll.u32 %s913_s25, 4  ;;  %s25_s24 = int_to_ptr.vmem [resolvable:$true] %s24_s24  ;;  %s52_s26 = int_to_ptr.vmem [resolvable:$true] %s51_s26 }
  0x16   :  { %s813_s29 = scalar_lea.hbm %s1122_s0, 128 }
  0x17   :  { %p814_p8 = scmp.ne.s32.totalorder %s1122_s0, %s813_s29  ;;  %p817_p9 = scmp.lt.u32.totalorder %s813_s29, %s1122_s0 }
  0x19   :  { %p819_p10 = pnand %p817_p9, %p814_p8 }
  0x1b   :  { %822 = shalt.err (!%p819_p10)
}
  0x1c   :  { %s823_s3 = scalar_lea.vmem %s25_s24, 128  ;;  %p828_p12 = scmp.lt.s32.totalorder %s25_s24, %s25_s24 }
  0x1d   :  { %p824_p11 = scmp.ne.s32.totalorder %s25_s24, %s823_s3  ;;  %p829_p13 = scmp.lt.s32.totalorder %s823_s3, %s823_s3 }
  0x1f   :  { %p830_p0 = por %p829_p13, %p828_p12 }
  0x21   :  { %p831_p1 = pnand %p830_p0, %p824_p11 }
  0x23   :  { %834 = shalt.err (!%p831_p1)
}
  0x24   :  { %27 = dma.hbm_to_vmem [thread:$0]  %s1122_s0, 128, %s25_s24, [#allocation4]  }
  0x25   :  { %s835_s17 = scalar_lea.hbm %s1127_s5, 1024 }
  0x26   :  { %p836_p2 = scmp.ne.s32.totalorder %s1127_s5, %s835_s17  ;;  %p839_p3 = scmp.lt.u32.totalorder %s835_s17, %s1127_s5 }
  0x28   :  { %p841_p4 = pnand %p839_p3, %p836_p2 }
  0x2a   :  { %844 = shalt.err (!%p841_p4)
}
  0x2b   :  { %s845_s25 = scalar_lea.vmem %s52_s26, 1024  ;;  %p850_p6 = scmp.lt.s32.totalorder %s52_s26, %s52_s26 }
  0x2c   :  { %p846_p5 = scmp.ne.s32.totalorder %s52_s26, %s845_s25  ;;  %p851_p7 = scmp.lt.s32.totalorder %s845_s25, %s845_s25 }
  0x2e   :  { %p852_p8 = por %p851_p7, %p850_p6 }
  0x30   :  { %p853_p9 = pnand %p852_p8, %p846_p5 }
  0x32   :  { %856 = shalt.err (!%p853_p9)
}
  0x33   :  { %57 = dma.hbm_to_vmem [thread:$0]  %s1127_s5, 1024, %s52_s26, [#allocation7], %s910_s19, %s910_s19, %s911_s20  }
  0x34   :  { %s914_s27 = smov [#allocation9]   ;;  %s857_s11 = scalar_lea.hbm %s1129_s7, 1024 }
  0x35   :  { %s65_s28 = sshll.u32 %s914_s27, 4  ;;  %p858_p10 = scmp.ne.s32.totalorder %s1129_s7, %s857_s11  ;;  %s66_s28 = int_to_ptr.vmem [resolvable:$true] %s65_s28 }
  0x36   :  { %p861_p11 = scmp.lt.u32.totalorder %s857_s11, %s1129_s7 }
  0x38   :  { %p863_p12 = pnand %p861_p11, %p858_p10 }
  0x3a   :  { %866 = shalt.err (!%p863_p12)
}
  0x3b   :  { %s867_s14 = scalar_lea.vmem %s66_s28, 1024  ;;  %p872_p0 = scmp.lt.s32.totalorder %s66_s28, %s66_s28 }
  0x3c   :  { %p868_p13 = scmp.ne.s32.totalorder %s66_s28, %s867_s14  ;;  %p873_p1 = scmp.lt.s32.totalorder %s867_s14, %s867_s14 }
  0x3e   :  { %p874_p2 = por %p873_p1, %p872_p0 }
  0x40   :  { %p875_p3 = pnand %p874_p2, %p868_p13 }
  0x42   :  { %878 = shalt.err (!%p875_p3)
}
  0x43   :  { %71 = dma.hbm_to_vmem [thread:$0]  %s1129_s7, 1024, %s66_s28, [#allocation10], %s910_s19, %s910_s19, %s911_s20  }
  0x44   :  { %901 = dma.done.wait [#allocation4], 128  }
  0x45   :  { %902 = vsyncadd [#allocation4], 4294967168 }
  0x46   :  { %903 = dma.done.wait [#allocation7], 2048  }
  0x47   :  { %904 = vsyncadd [#allocation7], 4294965248 }
  0x48   :  { %905 = dma.done.wait [#allocation10], 1024  }
  0x49   :  { %906 = vsyncadd [#allocation10], 4294966272  ;;  %v915_v0 = vmov 0   ;;  %v916_v1 = vmov 0.0   ;;  %v87_v2 = vld [vmem:[%s1123_s1] sm:$0xff]  ;;  %v767_v9 = vld [vmem:[#allocation6] sm:$0xff]  }
  0x4a   :  { %765 = vset.pattern.permute.xlu0 %v915_v0  ;;  %766 = vset.pattern.permute.xlu1 %v915_v0  ;;  %vm89_vm0 = vcmp.eq.s32.totalorder %v87_v2, 0  ;;  %vm123_vm1 = vcmp.eq.s32.totalorder %v87_v2, 2  ;;  %vm106_vm2 = vcmp.eq.s32.totalorder %v87_v2, 1  ;;  %vm140_vm3 = vcmp.eq.s32.totalorder %v87_v2, 3  ;;  %v768_v12 = vld [vmem:[#allocation6 + $0x8] sm:$0xff]   ;;  %v769_v15 = vld [vmem:[#allocation6 + $0x10] sm:$0xff]  }
  0x4b   :  { %695 = vmatprep.subr.bf16.mxu0 %v916_v1  ;;  %715 = vmatprep.subr.bf16.mxu1 %v916_v1  ;;  %v621_v3 = vsel %vm89_vm0, 1.0, %v916_v1  ;;  %v625_v4 = vsel %vm123_vm1, 1.0, %v916_v1  ;;  %vm157_vm4 = vcmp.eq.s32.totalorder %v87_v2, 4  ;;  %vm174_vm5 = vcmp.eq.s32.totalorder %v87_v2, 5  ;;  %v770_v16 = vld [vmem:[#allocation6 + $0x18] sm:$0xff]   ;;  %v771_v17 = vld [vmem:[#allocation6 + $0x20] sm:$0xff]  }
  0x4c   :  { %96 = vperm.xlu0 %765, %v621_v3   ;;  %130 = vperm.xlu1 %766, %v625_v4   ;;  %v623_v5 = vsel %vm106_vm2, 1.0, %v916_v1  ;;  %v627_v6 = vsel %vm140_vm3, 1.0, %v916_v1  ;;  %v629_v7 = vsel %vm157_vm4, 1.0, %v916_v1  ;;  %v631_v8 = vsel %vm174_vm5, 1.0, %v916_v1  ;;  %v772_v18 = vld [vmem:[#allocation6 + $0x28] sm:$0xff]   ;;  %v773_v19 = vld [vmem:[#allocation6 + $0x30] sm:$0xff]  }
  0x4d   :  { %vm191_vm6 = vcmp.eq.s32.totalorder %v87_v2, 6  ;;  %vm208_vm7 = vcmp.eq.s32.totalorder %v87_v2, 7  ;;  %696 = vmatpush3.bf16.msra.mxu0 %v767_v9  ;;  %vm225_vm8 = vcmp.eq.s32.totalorder %v87_v2, 8  ;;  %vm242_vm9 = vcmp.eq.s32.totalorder %v87_v2, 9  ;;  %v774_v20 = vld [vmem:[#allocation6 + $0x38] sm:$0xff]   ;;  %v775_v21 = vld [vmem:[#allocation8] sm:$0xff]  }
  0x4e   :  { %697 = vmatprep.subr.bf16.mxu0 %v916_v1  ;;  %v633_v10 = vsel %vm191_vm6, 1.0, %v916_v1  ;;  %v635_v11 = vsel %vm208_vm7, 1.0, %v916_v1  ;;  %v637_v13 = vsel %vm225_vm8, 1.0, %v916_v1  ;;  %v639_v14 = vsel %vm242_vm9, 1.0, %v916_v1  ;;  %716 = vmatpush3.bf16.msra.mxu1 %v775_v21  ;;  %v776_v22 = vld [vmem:[#allocation8 + $0x8] sm:$0xff]   ;;  %v777_v23 = vld [vmem:[#allocation8 + $0x10] sm:$0xff]  }
  0x4f   :  { %vm917_vm10 = vmmov 0   ;;  %717 = vmatprep.subr.bf16.mxu1 %v916_v1  ;;  %v778_v24 = vld [vmem:[#allocation8 + $0x18] sm:$0xff]   ;;  %v779_v25 = vld [vmem:[#allocation8 + $0x20] sm:$0xff]   ;;  %v780_v26 = vld [vmem:[#allocation8 + $0x28] sm:$0xff]   ;;  %vm262_vm11 = vcmask 195584   ;;  %s918_s15 = smov [#allocation11]  }
  0x50   :  { %113 = vperm.xlu0 %765, %v623_v5   ;;  %147 = vperm.xlu1 %766, %v627_v6   ;;  %v622_v27 = vld [vmem:[%s1124_s2] ss:$0 sm:$0xff]  ;;  %v624_v31 = vld [vmem:[%s1124_s2 + $0x1] ss:$0 sm:$0xff]  ;;  %v626_v32 = vld [vmem:[%s1124_s2 + $0x2] ss:$0 sm:$0xff] }
  0x51   :  { %698 = vmatpush3.bf16.msra.mxu0 %v768_v12  ;;  %711 = vmatprep.mubr.msk.bf16.mxu0 %vm917_vm10, %v916_v1  ;;  %v628_v36 = vld [vmem:[%s1124_s2 + $0x3] ss:$0 sm:$0xff]  ;;  %v630_v39 = vld [vmem:[%s1124_s2 + $0x4] ss:$0 sm:$0xff]  ;;  %v632_v44 = vld [vmem:[%s1124_s2 + $0x5] ss:$0 sm:$0xff] }
  0x52   :  { %699 = vmatprep.subr.bf16.mxu0 %v916_v1  ;;  %731 = vmatprep.mubr.msk.bf16.mxu1 %vm917_vm10, %v916_v1  ;;  %v634_v47 = vld [vmem:[%s1124_s2 + $0x6] ss:$0 sm:$0xff]  ;;  %v636_v52 = vld [vmem:[%s1124_s2 + $0x7] ss:$0 sm:$0xff]  ;;  %v638_v55 = vld [vmem:[%s1124_s2 + $0x8] ss:$0 sm:$0xff] }
  0x53   :  { %718 = vmatpush3.bf16.msra.mxu1 %v776_v22  ;;  %v640_v59 = vld [vmem:[%s1124_s2 + $0x9] ss:$0 sm:$0xff]  ;;  %v783_v9 = vld [vmem:[#allocation9] sm:$0xff]   ;;  %s610_s16 = sshll.u32 %s918_s15, 4  ;;  %s611_s16 = int_to_ptr.vmem [resolvable:$true] %s610_s16 }
  0x54   :  { %164 = vperm.xlu0 %765, %v629_v7   ;;  %181 = vperm.xlu1 %766, %v631_v8   ;;  %v260_v2 = vld [vmem:[#allocation3] sm:$0xff]  ;;  %v781_v7 = vld [vmem:[#allocation8 + $0x30] sm:$0xff]   ;;  %p884_p5 = scmp.lt.s32.totalorder %s611_s16, %s611_s16 }
  0x55   :  { %700 = vmatpush3.bf16.msra.mxu0 %v769_v15  ;;  %719 = vmatprep.subr.bf16.mxu1 %v916_v1  ;;  %v782_v8 = vld [vmem:[#allocation8 + $0x38] sm:$0xff]   ;;  %v641_v15 = vld [vmem:[%s1126_s4] ss:$0 sm:$0xff] }
  0x56   :  { %701 = vmatprep.subr.bf16.mxu0 %v916_v1  ;;  %v786_v12 = vld [vmem:[#allocation9 + $0x18] sm:$0xff]  }
  0x57   :  { %720 = vmatpush3.bf16.msra.mxu1 %v777_v23  ;;  %v789_v23 = vld [vmem:[#allocation9 + $0x30] sm:$0xff]  }
  0x58   :  { %198 = vperm.xlu0 %765, %v633_v10   ;;  %215 = vperm.xlu1 %766, %v635_v11   ;;  %v784_v10 = vld [vmem:[#allocation9 + $0x8] sm:$0xff]   ;;  %v785_v11 = vld [vmem:[#allocation9 + $0x10] sm:$0xff]  }
  0x59   :  { %702 = vmatpush3.bf16.msra.mxu0 %v770_v16  ;;  %721 = vmatprep.subr.bf16.mxu1 %v916_v1 }
  0x5a   :  { %703 = vmatprep.subr.bf16.mxu0 %v916_v1 }
  0x5b   :  { %722 = vmatpush3.bf16.msra.mxu1 %v778_v24  ;;  %v790_v24 = vld [vmem:[#allocation9 + $0x38] sm:$0xff]  }
  0x5c   :  { %232 = vperm.xlu0 %765, %v637_v13   ;;  %249 = vperm.xlu1 %766, %v639_v14   ;;  %v787_v13 = vld [vmem:[#allocation9 + $0x20] sm:$0xff]   ;;  %v788_v14 = vld [vmem:[#allocation9 + $0x28] sm:$0xff]  }
  0x5d   :  { %704 = vmatpush3.bf16.msra.mxu0 %v771_v17  ;;  %723 = vmatprep.subr.bf16.mxu1 %v916_v1 }
  0x5e   :  { %705 = vmatprep.subr.bf16.mxu0 %v916_v1 }
  0x5f   :  { %724 = vmatpush3.bf16.msra.mxu1 %v779_v25  ;;  %v650_v25 = vld [vmem:[%s1128_s6] ss:$0 sm:$0xff]  ;;  %s879_s6 = scalar_lea.vmem %s611_s16, 128 }
  0x60   :  { %725 = vmatprep.subr.bf16.mxu1 %v916_v1  ;;  %p880_p4 = scmp.ne.s32.totalorder %s611_s16, %s879_s6  ;;  %p885_p6 = scmp.lt.s32.totalorder %s879_s6, %s879_s6 }
  0x61   :  { %706 = vmatpush3.bf16.msra.mxu0 %v772_v18 }
  0x62   :  { %707 = vmatprep.subr.bf16.mxu0 %v916_v1  ;;  %p886_p7 = por %p885_p6, %p884_p5 }
  0x63   :  { %726 = vmatpush3.bf16.msra.mxu1 %v780_v26 }
  0x64   :  { %727 = vmatprep.subr.bf16.mxu1 %v916_v1  ;;  %p887_p8 = pnand %p886_p7, %p880_p4 }
  0x65   :  { %708 = vmatpush3.bf16.msra.mxu0 %v773_v19 }
  0x66   :  { %709 = vmatprep.subr.bf16.mxu0 %v916_v1 }
  0x67   :  { %728 = vmatpush3.bf16.msra.mxu1 %v781_v7 }
  0x68   :  { %729 = vmatprep.subr.bf16.mxu1 %v916_v1 }
  0x69   :  { %710 = vmatpush3.bf16.msra.mxu0 %v774_v20 }
  0x6a   :  { %735 = vmatprep.subr.bf16.mxu0 %v916_v1 }
  0x6b   :  { %730 = vmatpush3.bf16.msra.mxu1 %v782_v8 }
  0xcb   :  { %v97_v28 = vpop.permute.xlu0 %96  ;;  %v131_v29 = vpop.permute.xlu1 %130 }
  0xcc   :  { %v103_v30 = vmul.f32 %v622_v27, %v97_v28  ;;  %v137_v37 = vmul.f32 %v626_v32, %v131_v29 }
  0xcf   :  { %v114_v33 = vpop.permute.xlu0 %113  ;;  %v148_v34 = vpop.permute.xlu1 %147 }
  0xd0   :  { %v120_v35 = vmul.f32 %v624_v31, %v114_v33  ;;  %v154_v43 = vmul.f32 %v628_v36, %v148_v34  ;;  %v659_v33 = vld [vmem:[%s1130_s8] ss:$0 sm:$0xff] }
  0xd2   :  { %v121_v38 = vadd.f32 %v120_v35, %v103_v30 }
  0xd3   :  { %v165_v40 = vpop.permute.xlu0 %164  ;;  %v182_v41 = vpop.permute.xlu1 %181 }
  0xd4   :  { %v138_v42 = vadd.f32 %v137_v37, %v121_v38  ;;  %v171_v46 = vmul.f32 %v630_v39, %v165_v40  ;;  %v188_v51 = vmul.f32 %v632_v44, %v182_v41 }
  0xd6   :  { %v155_v45 = vadd.f32 %v154_v43, %v138_v42 }
  0xd7   :  { %v199_v48 = vpop.permute.xlu0 %198  ;;  %v216_v49 = vpop.permute.xlu1 %215 }
  0xd8   :  { %v172_v50 = vadd.f32 %v171_v46, %v155_v45  ;;  %v205_v54 = vmul.f32 %v634_v47, %v199_v48  ;;  %v222_v58 = vmul.f32 %v636_v52, %v216_v49 }
  0xda   :  { %v189_v53 = vadd.f32 %v188_v51, %v172_v50 }
  0xdb   :  { %v233_v56 = vpop.permute.xlu0 %232  ;;  %v250_v60 = vpop.permute.xlu1 %249 }
  0xdc   :  { %v206_v57 = vadd.f32 %v205_v54, %v189_v53  ;;  %v239_v62 = vmul.f32 %v638_v55, %v233_v56  ;;  %v256_v0 = vmul.f32 %v640_v59, %v250_v60 }
  0xde   :  { %v223_v61 = vadd.f32 %v222_v58, %v206_v57 }
  0xe0   :  { %v240_v63 = vadd.f32 %v239_v62, %v223_v61 }
  0xe2   :  { %v257_v3 = vadd.f32 %v256_v0, %v240_v63 }
  0xe4   :  { %258 = vst [vmem:[#allocation2] sm:$0xff] %v257_v3  ;;  %v261_v4 = vadd.f32 %v260_v2, %v257_v3 }
  0xe6   :  { %263 = vst.msk [vmem:[#allocation2] sm:$0xff] %vm262_vm11, %v261_v4 }
  0xed   :  { %v264_v5 = vld [vmem:[#allocation2] sm:$0xff] }
  0xee   :  { %v265_v6 = vpack.c.bf16 %v264_v5, %v264_v5 }
  0xf0   :  { %712 = vmatmul.mubr.bf16.vlgmr.msra.gmra.mrb[0].mxu0 %v265_v6 }
  0xf1   :  { %751 = vmatprep.mubr.msk.bf16.mxu0 %vm917_vm10, %v916_v1  ;;  %736 = vmatpush3.bf16.msra.mxu0 %v783_v9 }
  0xf2   :  { %737 = vmatprep.subr.bf16.mxu0 %v916_v1 }
  0xf5   :  { %738 = vmatpush3.bf16.msra.mxu0 %v784_v10 }
  0xf6   :  { %739 = vmatprep.subr.bf16.mxu0 %v916_v1 }
  0xf9   :  { %740 = vmatpush3.bf16.msra.mxu0 %v785_v11 }
  0xfa   :  { %741 = vmatprep.subr.bf16.mxu0 %v916_v1 }
  0xfd   :  { %742 = vmatpush3.bf16.msra.mxu0 %v786_v12 }
  0xfe   :  { %743 = vmatprep.subr.bf16.mxu0 %v916_v1 }
 0x101   :  { %744 = vmatpush3.bf16.msra.mxu0 %v787_v13 }
 0x102   :  { %745 = vmatprep.subr.bf16.mxu0 %v916_v1 }
 0x105   :  { %746 = vmatpush3.bf16.msra.mxu0 %v788_v14 }
 0x106   :  { %747 = vmatprep.subr.bf16.mxu0 %v916_v1 }
 0x109   :  { %748 = vmatpush3.bf16.msra.mxu0 %v789_v23 }
 0x10a   :  { %749 = vmatprep.subr.bf16.mxu0 %v916_v1 }
 0x10d   :  { %750 = vmatpush3.bf16.msra.mxu0 %v790_v24 }
 0x1c3   :  { %v371_v16 = vpop.f32.mrb[0].mxu0 }
 0x1c4   :  { %v372_v17 = vadd.f32 %v641_v15, %v371_v16  ;;  %v713_v18 = vpop.f32.mrb[1].mxu0 }
 0x1c5   :  { %v374_v19 = vpop.f32.mrb[2].mxu0 }
 0x1c6   :  { %v377_v20 = vmax.f32 %v372_v17, 0.0  ;;  %v714_v21 = vpop.f32.mrb[3].mxu0 }
 0x1c8   :  { %v378_v22 = vpack.c.bf16 %v377_v20, %v377_v20 }
 0x1ca   :  { %732 = vmatmul.mubr.bf16.vlgmr.msra.gmra.mrb[0].mxu1 %v378_v22 }
 0x29d   :  { %v484_v26 = vpop.f32.mrb[0].mxu1 }
 0x29e   :  { %v485_v27 = vadd.f32 %v650_v25, %v484_v26  ;;  %v733_v28 = vpop.f32.mrb[1].mxu1 }
 0x29f   :  { %v487_v29 = vpop.f32.mrb[2].mxu1 }
 0x2a0   :  { %v490_v30 = vmax.f32 %v485_v27, 0.0  ;;  %v734_v31 = vpop.f32.mrb[3].mxu1 }
 0x2a2   :  { %v491_v32 = vpack.c.bf16 %v490_v30, %v490_v30 }
 0x2a4   :  { %752 = vmatmul.mubr.bf16.vlgmr.msra.gmra.mrb[4].mxu0 %v491_v32 }
 0x377   :  { %v597_v1 = vpop.f32.mrb[4].mxu0 }
 0x378   :  { %v598_v34 = vadd.f32 %v659_v33, %v597_v1  ;;  %v753_v35 = vpop.f32.mrb[5].mxu0 }
 0x379   :  { %v600_v36 = vpop.f32.mrb[6].mxu0 }
 0x37a   :  { %603 = vst.msk [vmem:[#allocation11] sm:$0xff] %vm262_vm11, %v598_v34  ;;  %v754_v37 = vpop.f32.mrb[7].mxu0 }
 0x37b   :  { %890 = shalt.err (!%p887_p8)
}
 0x37c   :  { %s891_s8 = scalar_lea.hbm %s1131_s9, 128 }
 0x37d   :  { %p892_p9 = scmp.ne.s32.totalorder %s1131_s9, %s891_s8  ;;  %p895_p10 = scmp.lt.u32.totalorder %s891_s8, %s1131_s9 }
 0x37f   :  { %p897_p11 = pnand %p895_p10, %p892_p9 }
 0x381   :  { %900 = shalt.err (!%p897_p11)
}
 0x382   :  { %613 = dma.vmem_to_hbm [thread:$0]  %s611_s16, 128, %s1131_s9, [#allocation5]  }
 0x383   :  { %907 = dma.done.wait [#allocation5], 128  }
 0x384   :  { %908 = vsyncadd [#allocation5], 4294967168 }
 0x385   :  { %617 = vsyncpa [#allocation4], 1 }
 0x386   :  { %618 = vsyncpa [#allocation7], 1 }
 0x387   :  { %619 = vsyncpa [#allocation10], 1 }
 0x388   :  { %620 = vsyncpa [#allocation5], 1 }

</bundles_post_ra>
